<compile_context>
chip_gen: v5e
topology: v5e:2x2
jax: 0.10.0
libtpu: 0.0.40
codegen_flags: <defaults>
</compile_context>

<pallas_src>
import jax
import jax.numpy as jnp
from jax.experimental import pallas as pl
from jax.experimental.pallas import tpu as pltpu


def _pembed_kernel(x_ref, e_ref, o_ref):
    # x_ref/o_ref: (TB, TN) block of the flattened (B, S*D) activations.
    # e_ref:       (1, TN)  block of the flattened (1, S*D) embedding slab.
    o_ref[...] = x_ref[...] + e_ref[...]          # sublane-broadcast add (VPU)


def _round_up(x, m):
    return ((x + m - 1) // m) * m


def _select_tiles(B, SD, itemsize, block_bytes, vmem_budget):
    """Pick (tb, tn) tiles for a (B, SD) broadcast-add.

    tn (lane axis) is a multiple of 128 or the full flat dim; tb is the full
    batch or a multiple of the dtype's sublane packing factor."""
    sub = {4: 8, 2: 16, 1: 32}.get(itemsize, 8)       # rows per packed sublane group
    max_elems = max(128, block_bytes // itemsize)     # per x/out block
    vmem_elems = max(128, vmem_budget // itemsize)    # total double-buffered budget

    # --- lane tile along the flattened S*D axis (multiple of 128, or full) ---
    tb_min = B if B < sub else sub
    lane_by_block = max_elems // tb_min
    # 2 buffers * (x block + out block + sublane-padded (8, tn) e block)
    lane_by_vmem = vmem_elems // (2 * (2 * tb_min + 8))
    lane_budget = max(128, (min(lane_by_block, lane_by_vmem) // 128) * 128)
    tn = SD if SD <= lane_budget else lane_budget

    # --- batch tile (multiple of sub, or the full batch) ---
    tb_by_block = max_elems // tn
    tb_by_vmem = (vmem_elems // (2 * tn) - 8) // 2
    tb_budget = max(1, min(tb_by_block, tb_by_vmem))
    if B <= tb_budget:
        tb = B
    elif tb_budget >= sub:
        tb = (tb_budget // sub) * sub
    else:
        tb = min(B, sub)

    # --- v7x megacore: give the sharded (leading) grid axis >= 2 steps ---
    if pl.cdiv(SD, tn) == 1 and pl.cdiv(B, tb) == 1:
        if SD >= 256:
            tn = _round_up(pl.cdiv(SD, 2), 128)
        elif B >= 2 * sub:
            tb = _round_up(pl.cdiv(B, 2), sub)
    return tb, tn


def pembeder_forward(x, embed_weight, idx=None, *, block_bytes=8 << 20,
                     vmem_budget_bytes=40 << 20, donate_x=False):
    """out = x + embed_weight[idx]   (idx broadcast over batch; defaults to arange(S))."""
    B, S, D = x.shape

    # Match PyTorch type promotion (e.g. bf16 x + f32 table -> f32 result).
    out_dtype = jnp.result_type(x.dtype, embed_weight.dtype)

    # Gather the (S, D) slab once in the wrapper (tiny vs. the B*S*D traffic).
    if idx is None:
        e = jax.lax.slice_in_dim(embed_weight, 0, S, axis=0)  # arange gather == slice
    else:
        e = jnp.take(embed_weight, idx.astype(jnp.int32), axis=0)

    SD = S * D
    x2 = x.astype(out_dtype).reshape(B, SD)    # free row-major view: lane-dense layout
    e2 = e.astype(out_dtype).reshape(1, SD)

    itemsize = jnp.dtype(out_dtype).itemsize
    tb, tn = _select_tiles(B, SD, itemsize, block_bytes, vmem_budget_bytes)
    grid = (pl.cdiv(SD, tn), pl.cdiv(B, tb))   # batch innermost -> e tile DMA'd once

    # Double-buffered x + out blocks plus the (sublane-padded to 8 rows) e block.
    vmem_need = 2 * (2 * tb * tn + 8 * tn) * itemsize
    vmem_limit = max(int(vmem_need) + (4 << 20), 16 << 20)

    out2 = pl.pallas_call(
        _pembed_kernel,
        out_shape=jax.ShapeDtypeStruct((B, SD), out_dtype),
        grid=grid,
        in_specs=[
            pl.BlockSpec((tb, tn), lambda n, b: (b, n)),
            pl.BlockSpec((1, tn), lambda n, b: (0, n)),
        ],
        out_specs=pl.BlockSpec((tb, tn), lambda n, b: (b, n)),
        compiler_params=pltpu.CompilerParams(
            dimension_semantics=("parallel", "parallel"),
            vmem_limit_bytes=vmem_limit),
        input_output_aliases=({0: 0} if donate_x else {}),
    )(x2, e2)
    return out2.reshape(B, S, D)


def init_pembeder_params(key, vocab_size, d_model, dtype=jnp.float32):
    """Deterministic kaiming_normal_(mode='fan_in') init of the embedding table.

    For a (V, D) weight, PyTorch fan_in = D, gain = sqrt(2)  ->  std = sqrt(2 / D)."""
    std = jnp.sqrt(2.0 / d_model)
    w = jax.random.normal(key, (vocab_size, d_model), dtype=jnp.float32) * std
    return w.astype(dtype)


if __name__ == "__main__":
    key = jax.random.PRNGKey(0)
    k_x, k_w, k_x2, k_w2, k_x3, k_w3, k_x4, k_w4 = jax.random.split(key, 8)

    # --- small demo shapes implied by the module ---
    B, S, D, VOCAB = 2, 8, 32, 16
    x = jax.random.normal(k_x, (B, S, D), dtype=jnp.float32)
    embed_w = init_pembeder_params(k_w, VOCAB, D)

    # default idx=None path (idx = arange(S))
    out = jax.block_until_ready(pembeder_forward(x, embed_w))
    ref = x + embed_w[jnp.arange(S)][None, :, :]
    assert out.shape == (B, S, D)
    assert jnp.allclose(out, ref, atol=1e-6, rtol=1e-6)

    # explicit idx path
    idx = jnp.array([3, 1, 4, 1, 5, 9, 2, 6], dtype=jnp.int32)
    out2 = jax.block_until_ready(pembeder_forward(x, embed_w, idx))
    ref2 = x + embed_w[idx][None, :, :]
    assert jnp.allclose(out2, ref2, atol=1e-6, rtol=1e-6)

    # --- larger shape: multi-block lane-dense path ---
    B2, S2, D2, V2 = 4, 256, 128, 512
    x_big = jax.random.normal(k_x2, (B2, S2, D2), dtype=jnp.float32)
    w_big = init_pembeder_params(k_w2, V2, D2)
    out3 = jax.block_until_ready(pembeder_forward(x_big, w_big))
    ref3 = x_big + w_big[jnp.arange(S2)][None, :, :]
    assert jnp.allclose(out3, ref3, atol=1e-6, rtol=1e-6)

    # --- awkward (non-dividing) shape: exercises the cdiv grid / masked edge block ---
    B3, S3, D3, V3 = 3, 10, 48, 32
    x_odd = jax.random.normal(k_x3, (B3, S3, D3), dtype=jnp.float32)
    w_odd = init_pembeder_params(k_w3, V3, D3)
    out4 = jax.block_until_ready(pembeder_forward(x_odd, w_odd))
    ref4 = x_odd + w_odd[jnp.arange(S3)][None, :, :]
    assert jnp.allclose(out4, ref4, atol=1e-6, rtol=1e-6)

    # --- bf16 activations + f32 table: PyTorch-style promotion to f32 ---
    B4, S4, D4, V4 = 2, 16, 64, 64
    x_bf = jax.random.normal(k_x4, (B4, S4, D4), dtype=jnp.float32).astype(jnp.bfloat16)
    w_f32 = init_pembeder_params(k_w4, V4, D4)
    out5 = jax.block_until_ready(pembeder_forward(x_bf, w_f32))
    ref5 = x_bf.astype(jnp.float32) + w_f32[jnp.arange(S4)][None, :, :]
    assert out5.dtype == jnp.float32
    assert jnp.allclose(out5, ref5, atol=1e-5, rtol=1e-5)

    print("KERNEL_OK")
</pallas_src>

<mosaic_0001>
module attributes {stable_mosaic.version = 11 : i64} {
  func.func @_pembed_kernel(%arg0: i32, %arg1: i32, %arg2: memref<2x128xf32, #tpu.memory_space<vmem>>, %arg3: memref<1x128xf32, #tpu.memory_space<vmem>>, %arg4: memref<2x128xf32, #tpu.memory_space<vmem>>) attributes {dimension_semantics = [#tpu.dimension_semantics<parallel>, #tpu.dimension_semantics<parallel>], iteration_bounds = array<i64: 2, 1>, scalar_prefetch = 0 : i64, scratch_operands = 0 : i64, tpu.core_type = #tpu.core_type<tc>, window_params = [{transform_indices = @transform_0, window_bounds = array<i64: 2, 128>}, {transform_indices = @transform_1, window_bounds = array<i64: 1, 128>}, {transform_indices = @transform_2, window_bounds = array<i64: 2, 128>}]} {
    %c0 = arith.constant 0 : index
    %c0_0 = arith.constant 0 : index
    %0 = vector.load %arg2[%c0, %c0_0] : memref<2x128xf32, #tpu.memory_space<vmem>>, vector<2x128xf32>
    %c0_1 = arith.constant 0 : index
    %c0_2 = arith.constant 0 : index
    %1 = vector.load %arg3[%c0_1, %c0_2] : memref<1x128xf32, #tpu.memory_space<vmem>>, vector<1x128xf32>
    %2 = vector.broadcast %1 : vector<1x128xf32> to vector<2x128xf32>
    %3 = arith.addf %0, %2 : vector<2x128xf32>
    %c0_3 = arith.constant 0 : index
    %c0_4 = arith.constant 0 : index
    %4 = vector.load %arg4[%c0_3, %c0_4] : memref<2x128xf32, #tpu.memory_space<vmem>>, vector<2x128xf32>
    tpu.vector_store %arg4[%c0_3, %c0_4], %3 {strides = array<i32>} : memref<2x128xf32, #tpu.memory_space<vmem>>, vector<2x128xf32>,
    return
  }
  func.func @transform_0(%arg0: i32, %arg1: i32) -> (i32, i32) {
    %c0_i32 = arith.constant 0 : i32
    return %arg1, %arg0 : i32, i32
  }
  func.func @transform_1(%arg0: i32, %arg1: i32) -> (i32, i32) {
    %c0_i32 = arith.constant 0 : i32
    %c0_i32_0 = arith.constant 0 : i32
    return %c0_i32, %arg0 : i32, i32
  }
  func.func @transform_2(%arg0: i32, %arg1: i32) -> (i32, i32) {
    %c0_i32 = arith.constant 0 : i32
    return %arg1, %arg0 : i32, i32
  }
}

</mosaic_0001>

<bundles_post_ra>
// kernel: tpu_custom_call.1
= control target key start
LH: loop header
LB: loop body
LE: loop exit
PB: predicated region body
PF: predicated region fallthrough
CT: control target
= control target key end

     0   :  { %7 = vsyncpa [#allocation3], 0  ;;  %s714_s0 = inlined_call_operand.hbm [shape: f32[2,256], index: 0, kind: input, shape index: {}]   ;;  %s715_s1 = inlined_call_operand.hbm [shape: f32[1,256], index: 1, kind: input, shape index: {}]   ;;  %s716_s2 = inlined_call_operand.hbm [shape: f32[2,256], index: 2, kind: output, shape index: {}]  }
   0x1   :  { %9 = vsyncpa [#allocation3 + $0x1], 0 }
   0x2   :  { %10 = vsyncpa [#allocation6], 0 }
   0x3   :  { %12 = vsyncpa [#allocation6 + $0x1], 0 }
   0x4   :  { %13 = vsyncpa [#allocation4], 0 }
   0x5   :  { %15 = vsyncpa [#allocation4 + $0x1], 0  ;;  %s584_s9 = smov 0   ;;  %s586_s10 = smov 0  }
   0x6   :  { %s588_s11 = smov 0   ;;  %s590_s12 = smov 0  }
   0x7   :  { %s592_s13 = smov 0   ;;  %s594_s14 = smov 0  }
   0x8 LB: > { %s340_s15 = sadd.s32 4294967295, %s567_s14   ;;  %s341_s16 = sadd.s32 4294967294, %s567_s14   ;;  %s567_s14 = sphi %s594_s14, %s21_s14   ;;  %s563_s13 = sphi %s592_s13, %s725_s13   ;;  %s559_s12 = sphi %s590_s12, %s724_s12   ;;  %s555_s11 = sphi %s588_s11, %s723_s11   ;;  %s551_s10 = sphi %s586_s10, %s722_s10   ;;  %s547_s9 = sphi %s584_s9, %s721_s9  }
   0x9   : > { %s33_s17 = sadd.s32 1, %s563_s13  ;;  %s42_s18 = sadd.s32 1, %s555_s11 }
   0xa   : > { %p35_p0 = scmp.ge.s32.totalorder %s33_s17, 2  ;;  %p49_p1 = scmp.ne.s32.totalorder %s555_s11, %s551_s10 }
   0xb   : > { %p50_p2 = scmp.eq.s32.totalorder %s567_s14, 0  ;;  %p55_p3 = scmp.ne.s32.totalorder %s551_s10, %s547_s9 }
   0xc   : > { %s727_s17 = smov (%p35_p0, %s33_s17), 0  ;;  %p56_p5 = scmp.eq.s32.totalorder %s340_s15, 0 }
   0xd   : > { %p625_p4 = por %p50_p2, %p49_p1  ;;  %s38_s20 = ssub.s32 %s563_s13, %s727_s17 }
   0xe   : > { %p107_p6 = scmp.eq.s32.totalorder %s340_s15, 1  ;;  %p40_p7 = scmp.eq.s32.totalorder %s38_s20, 0 }
   0xf   : > { %p631_p8 = por %p56_p5, %p55_p3  ;;  %p113_p10 = scmp.eq.s32.totalorder %s341_s16, 1 }
  0x10   : > { %p635_p9 = por %p107_p6, %p49_p1  ;;  %p343_p12 = scmp.ge.s32.totalorder %s567_s14, 2 }
  0x11   : > { %s640_s23 = scalar_select %p40_p7, %s555_s11, %s42_s18  }
  0x12   : > { %p642_p11 = por %p113_p10, %p55_p3  ;;  %p370_p13 = scmp.lt.s32.totalorder %s567_s14, 2 }
  0x13   : > { %s133_s25 = sand.u32 1, %s555_s11   ;;  %s345_s27 = sshll.u32 %s563_s13, 1 }
  0x14   : > { %s344_s26 = sshll.u32 %s133_s25, 1  ;;  %s143_s30 = scalar_lea.hbm %s714_s0, %s345_s27 }
  0x15   : > { %s137_s3 = scalar_lea.vmem [#allocation2], %s344_s26  ;;  %s145_s5 = sshll.u32 %s143_s30, 4  ;;  %s146_s5 = int_to_ptr.hbm [resolvable:$true] %s145_s5 }
  0x16   : > { %s147_s4 = sshll.u32 %s137_s3, 4  ;;  %p360_p0 = pnand %p370_p13, %p625_p4  ;;  %s148_s4 = int_to_ptr.vmem [resolvable:$true] %s147_s4 }
  0x17   : > { %p346_p1 = scmp.ge.s32.totalorder %s567_s14, 1  ;;  %p169_p2 = scmp.lt.s32.totalorder %s567_s14, 3 }
  0x18   : > { %s134_s6 = scalar_lea.sflag [#allocation3], %s133_s25  ;;  %s160_s15 = scalar_lea.hbm %s715_s1, %s563_s13 }
  0x19   : > { %362 = dma.hbm_to_vmem [thread:$0]  (!%p360_p0), %s146_s5, 32, %s148_s4, %s134_s6  }
  0x1a   : > { %p170_p3 = pnand %p346_p1, %p169_p2  ;;  %s157_s16 = scalar_lea.vmem [#allocation5], %s133_s25 }
  0x1b   : > { %s164_s18 = sshll.u32 %s157_s16, 4  ;;  %s162_s20 = sshll.u32 %s160_s15, 4  ;;  %s165_s18 = int_to_ptr.vmem [resolvable:$true] %s164_s18  ;;  %s163_s20 = int_to_ptr.hbm [resolvable:$true] %s162_s20 }
  0x1c   : > { %s155_s26 = scalar_lea.sflag [#allocation6], %s133_s25  ;;  %173 = sbr.rel (%p170_p3) target bundleno = 51 (0x33), region = 28 }
  0x1d   : > { %365 = dma.hbm_to_vmem [thread:$0]  (!%p360_p0), %s163_s20, 16, %s165_s18, %s155_s26  }
  0x1e   : > { %s662_s19 = sand.u32 (!%p170_p3), 1, %s551_s10  }
  0x1f   : > { %s347_s27 = sshll.u32 (!%p170_p3), %s662_s19, 1  ;;  %s176_s28 = scalar_lea.sflag (!%p170_p3), [#allocation3], %s662_s19 }
  0x20   : > { %s179_s29 = scalar_lea.vmem (!%p170_p3), [#allocation2], %s347_s27 }
  0x21   : > { %534 = dma.done.wait (%p631_p8), %s176_s28, 32  }
  0x22   : > { %536 = vsyncadd (%p631_p8), %s176_s28, 4294967264  ;;  %s186_s25 = scalar_lea.sflag [#allocation6], %s662_s19  ;;  %s188_s30 = scalar_lea.vmem [#allocation5], %s662_s19 }
  0x23   : > { %538 = dma.done.wait (%p631_p8), %s186_s25, 16  }
  0x24   : > { %540 = vsyncadd (%p631_p8), %s186_s25, 4294967280  ;;  %s350_s3 = sshll.u32 %s559_s12, 1  ;;  %s213_s7 = scalar_lea.vmem [#allocation7], %s347_s27  ;;  %v214_v0 = vld [vmem:[%s179_s29] sm:$0x3] }
  0x25   : > { %s234_s6 = scalar_lea.hbm %s716_s2, %s350_s3  ;;  %s236_s8 = sshll.u32 %s213_s7, 4  ;;  %v420_v1 = vld [vmem:[%s188_s30] ss:$0 sm:$0xff]  ;;  %s237_s8 = int_to_ptr.vmem [resolvable:$true] %s236_s8 }
  0x26   : > { %s238_s15 = sshll.u32 %s234_s6, 4  ;;  %v219_v2 = vadd.f32 %v420_v1, %v214_v0  ;;  %s222_s16 = scalar_lea.sflag [#allocation4], %s662_s19  ;;  %s239_s15 = int_to_ptr.hbm [resolvable:$true] %s238_s15 }
  0x27   : > { %s495_s21 = sshra.s32 %s239_s15, 4  ;;  %s501_s26 = scalar_lea.hbm %s716_s2, 4  ;;  %s496_s21 = int_to_ptr.hbm [resolvable:$true] %s495_s21 }
  0x28   : > { %220 = vst [vmem:[%s213_s7] sm:$0x3] %v219_v2  ;;  %s497_s18 = scalar_lea.hbm %s496_s21, 2  ;;  %p502_p7 = scmp.lt.s32.totalorder %s496_s21, %s716_s2 }
  0x29   : > { %p498_p4 = scmp.ne.s32.totalorder %s496_s21, %s497_s18  ;;  %p503_p8 = scmp.lt.s32.totalorder %s501_s26, %s497_s18 }
  0x2b   : > { %p499_p5 = pnand %p498_p4, %p635_p9  ;;  %p504_p10 = por %p503_p8, %p502_p7 }
  0x2d   : > { %p500_p6 = pneg %p499_p5 }
  0x2f   : > { %p505_p13 = pnand %p504_p10, %p500_p6 }
  0x31   : > { %508 = shalt.err (!%p505_p13)
}
  0x32   : > { %357 = dma.vmem_to_hbm [thread:$0]  (%p635_p9), %s237_s8, 32, %s239_s15, %s222_s16  }
  0x33 PF: > { %s250_s19 = sand.u32 1, %s547_s9   ;;  %p367_p0 = pnand %p343_p12, %p642_p11 }
  0x34   : > { %s251_s29 = scalar_lea.sflag [#allocation4], %s250_s19 }
  0x35   : > { %p368_p1 = pneg %p367_p0 }
  0x37   : > { %542 = dma.done.wait (%p368_p1), %s251_s29, 32  }
  0x38   : > { %544 = vsyncadd (%p368_p1), %s251_s29, 4294967264  ;;  %s21_s14 = sadd.s32 1, %s567_s14   ;;  %s721_s9 = smov %s551_s10 }
  0x39   : > { %p18_p2 = scmp.ge.s32.totalorder %s21_s14, 4   ;;  %s722_s10 = smov %s555_s11 }
  0x3a   : > { %s723_s11 = smov %s640_s23  ;;  %s724_s12 = smov %s563_s13 }
  0x3b   : > { %s725_s13 = smov %s727_s17  ;;  %20 = sbr.rel (!%p18_p2) target bundleno = 8 (0x8), region = 86 }
  0x40   :  { %257 = vsyncpa [#allocation3], 1 }
  0x41   :  { %259 = vsyncpa [#allocation3 + $0x1], 1 }
  0x42   :  { %260 = vsyncpa [#allocation6], 1 }
  0x43   :  { %262 = vsyncpa [#allocation6 + $0x1], 1 }
  0x44   :  { %263 = vsyncpa [#allocation4], 1 }
  0x45   :  { %265 = vsyncpa [#allocation4 + $0x1], 1 }

</bundles_post_ra>
